<compile_context>
chip_gen: v7x
topology: tpu7x:2x2x1
jax: 0.10.0
libtpu: 0.0.40
codegen_flags: <defaults>
</compile_context>

<pallas_src>
import jax
import jax.numpy as jnp
from jax.experimental import pallas as pl
from jax.experimental.pallas import tpu as pltpu


# ----------------------------- Pallas kernel ------------------------------- #

def linear_kernel(w_ref, x_ref, o_ref):
    # w_ref: (1, 1) f32 scalar in SMEM; x_ref: (TM, 128) native dtype in VMEM;
    # o_ref: (TM, 128) f32 in VMEM.  nn.Linear(1, 1, bias=False) is a scale by
    # the single weight; the f32 cast happens here so HBM reads stay narrow.
    o_ref[...] = x_ref[...].astype(jnp.float32) * w_ref[0, 0]


# ------------------------------ wrapper ------------------------------------ #

_LANES = 128          # vreg lane width
_TM_MAX = 2048        # rows/block: 2048*128*4 B = 1 MiB per f32 buffer
_SMALL_N = 32 * 1024  # below this, a fused XLA multiply beats kernel launch cost


def _round_up(x, m):
    return -(-x // m) * m


def linear_forward(x, weight):
    """Equivalent of linear.forward(x): x.to(float32) @ weight.T (weight (1,1), no bias).

    Accepts x of shape (..., 1) (any leading dims); returns the same shape in f32.
    """
    orig_shape = x.shape
    w = weight.astype(jnp.float32).reshape(1, 1)
    flat = x.reshape(-1)
    n = flat.shape[0]

    # Small-input fast path: kernel launch (~us) dwarfs the work; let XLA fuse it.
    if n < _SMALL_N:
        return (flat.astype(jnp.float32) * w[0, 0]).reshape(orig_shape)

    # Lane-dense view: (rows, 128). Only pad when n is ragged mod 128; the
    # common aligned case has zero extra HBM passes (reshape is free).
    # TODO(synk): ragged tails could instead be masked in-kernel via a
    # scalar-prefetched length, avoiding even this small pad/slice copy.
    padded = _round_up(n, _LANES)
    flat_p = flat if padded == n else jnp.pad(flat, (0, padded - n))
    x2d = flat_p.reshape(padded // _LANES, _LANES)
    rows = x2d.shape[0]

    # Block rows: as large as sensible, but keep >= 2 grid steps so both v7x
    # TensorCores get sharded work via the "parallel" axis.  Multiple of 32
    # keeps the sublane dim tile-aligned for f32/bf16/int8 inputs alike.
    tm = min(_TM_MAX, _round_up(-(-rows // 2), 32))
    grid = (pl.cdiv(rows, tm),)

    extra = {}
    if x2d.dtype == jnp.float32:
        # Donate the (possibly freshly padded) f32 slab as the output buffer.
        extra["input_output_aliases"] = {1: 0}

    out2d = pl.pallas_call(
        linear_kernel,
        out_shape=jax.ShapeDtypeStruct((rows, _LANES), jnp.float32),
        grid=grid,
        in_specs=[
            # scalar weight, resident in SMEM for the whole grid
            pl.BlockSpec(memory_space=pltpu.MemorySpace.SMEM),
            # lane-dense data tiles (native dtype)
            pl.BlockSpec((tm, _LANES), lambda i: (i, 0)),
        ],
        out_specs=pl.BlockSpec((tm, _LANES), lambda i: (i, 0)),
        compiler_params=pltpu.CompilerParams(
            dimension_semantics=("parallel",)),
        **extra,
    )(w, x2d)

    out_flat = out2d.reshape(-1)
    if padded != n:
        out_flat = out_flat[:n]
    return out_flat.reshape(orig_shape)


# -------------------------------- main -------------------------------------- #

if __name__ == "__main__":
    key = jax.random.PRNGKey(0)
    kw, kx1, kx2, kx3 = jax.random.split(key, 4)

    # nn.Linear(1, 1).weight initializes ~ U(-1, 1); use a deterministic draw.
    weight = jax.random.uniform(kw, (1, 1), jnp.float32, minval=-1.0, maxval=1.0)

    def check(xin):
        out = linear_forward(xin, weight)
        jax.block_until_ready(out)
        expected = xin.astype(jnp.float32) * weight[0, 0]
        assert out.shape == xin.shape
        assert out.dtype == jnp.float32
        assert jnp.allclose(out, expected, atol=1e-6, rtol=1e-6)

    # 1) tiny batch of survival samples (1 feature each) -> fused-XLA fast path
    check(jax.random.normal(kx1, (16, 1), jnp.float32))
    # 2) larger batch, length a multiple of 128 -> Pallas kernel, no pad / no slice,
    #    2 grid steps so both v7x TensorCores participate
    check(jax.random.normal(kx2, (64 * 1024, 1), jnp.float32))
    # 3) ragged batch -> Pallas kernel with a 128-pad and a masked partial last block
    check(jax.random.normal(kx3, (64 * 1024 + 100, 1), jnp.float32))

    print("KERNEL_OK")
</pallas_src>

<mosaic_0001>
module attributes {stable_mosaic.version = 11 : i64} {
  func.func @linear_kernel(%arg0: i32, %arg1: memref<1x1xf32, #tpu.memory_space<smem>>, %arg2: memref<256x128xf32, #tpu.memory_space<vmem>>, %arg3: memref<256x128xf32, #tpu.memory_space<vmem>>) attributes {dimension_semantics = [#tpu.dimension_semantics<parallel>], iteration_bounds = array<i64: 2>, scalar_prefetch = 0 : i64, scratch_operands = 0 : i64, tpu.core_type = #tpu.core_type<tc>, window_params = [{transform_indices = @transform_0, window_bounds = array<i64: 1, 1>}, {transform_indices = @transform_1, window_bounds = array<i64: 256, 128>}, {transform_indices = @transform_2, window_bounds = array<i64: 256, 128>}]} {
    %c0 = arith.constant 0 : index
    %c0_0 = arith.constant 0 : index
    %0 = vector.load %arg2[%c0, %c0_0] : memref<256x128xf32, #tpu.memory_space<vmem>>, vector<256x128xf32>
    %c0_1 = arith.constant 0 : index
    %c0_2 = arith.constant 0 : index
    %1 = memref.load %arg1[%c0_1, %c0_2] : memref<1x1xf32, #tpu.memory_space<smem>>
    %2 = vector.broadcast %1 : f32 to vector<256x128xf32>
    %3 = arith.mulf %0, %2 : vector<256x128xf32>
    %c0_3 = arith.constant 0 : index
    %c0_4 = arith.constant 0 : index
    %4 = vector.load %arg3[%c0_3, %c0_4] : memref<256x128xf32, #tpu.memory_space<vmem>>, vector<256x128xf32>
    tpu.vector_store %arg3[%c0_3, %c0_4], %3 {strides = array<i32>} : memref<256x128xf32, #tpu.memory_space<vmem>>, vector<256x128xf32>,
    return
  }
  func.func @transform_0(%arg0: i32) -> (i32, i32) {
    %c0_i32 = arith.constant 0 : i32
    %c0_i32_0 = arith.constant 0 : i32
    %c0_i32_1 = arith.constant 0 : i32
    return %c0_i32, %c0_i32_0 : i32, i32
  }
  func.func @transform_1(%arg0: i32) -> (i32, i32) {
    %c0_i32 = arith.constant 0 : i32
    %c0_i32_0 = arith.constant 0 : i32
    return %arg0, %c0_i32 : i32, i32
  }
  func.func @transform_2(%arg0: i32) -> (i32, i32) {
    %c0_i32 = arith.constant 0 : i32
    %c0_i32_0 = arith.constant 0 : i32
    return %arg0, %c0_i32 : i32, i32
  }
}

</mosaic_0001>

<bundles_post_ra>
// kernel: tpu_custom_call.1
= control target key start
LH: loop header
LB: loop body
LE: loop exit
PB: predicated region body
PF: predicated region fallthrough
CT: control target
= control target key end

     0   :  { %s803_s0 = inlined_call_operand.<no memory space> [shape: f32[1,1], index: 0, kind: input, shape index: {}]   ;;  %s804_s1 = inlined_call_operand.hbm [shape: f32[512,128], index: 1, kind: input, shape index: {}, may-alias: {1,2}]   ;;  %s805_s2 = inlined_call_operand.hbm [shape: f32[512,128], index: 2, kind: output, shape index: {}, may-alias: {1,2}]  }
   0x1   :  { %7 = sst [smem:[#allocation2]] %s803_s0 }
   0x2   :  { %8 = vsyncpa [#allocation4], 0 }
   0x3   :  { %10 = vsyncpa [#allocation4 + $0x1], 0 }
   0x4   :  { %11 = vsyncpa [#allocation5], 0 }
   0x5   :  { %13 = vsyncpa [#allocation5 + $0x1], 0  ;;  %s538_s11 = smov 0   ;;  %s540_s12 = smov 0  }
   0x6   :  { %s542_s13 = smov 0   ;;  %s544_s14 = smov 0  }
   0x7 LB: > { %s559_s0 = sadd.s32 4294967295, %s512_s14   ;;  %s350_s15 = sadd.s32 4294967294, %s512_s14   ;;  %s512_s14 = sphi %s544_s14, %s818_s14   ;;  %s508_s13 = sphi %s542_s13, %s817_s13   ;;  %s504_s12 = sphi %s540_s12, %s816_s12   ;;  %s500_s11 = sphi %s538_s11, %s815_s11  }
   0x8   : > { %s563_s16 = sadd.s32 1, %s512_s14   ;;  %s47_s17 = sadd.s32 1, %s508_s13 }
   0x9   : > { %s44_s18 = ssub.s32 %s512_s14, %s563_s16  ;;  %p54_p0 = scmp.ne.s32.totalorder %s508_s13, %s504_s12 }
   0xa   : > { %p45_p1 = scmp.eq.s32.totalorder %s44_s18, 0  ;;  %p55_p2 = scmp.eq.s32.totalorder %s512_s14, 0 }
   0xb   : > { %p60_p3 = scmp.ne.s32.totalorder %s504_s12, %s500_s11  ;;  %p61_p4 = scmp.eq.s32.totalorder %s559_s0, 0 }
   0xc   : > { %s575_s19 = scalar_select %p45_p1, %s508_s13, %s47_s17  }
   0xd   : > { %p577_p5 = por %p55_p2, %p54_p0  ;;  %p581_p6 = por %p61_p4, %p60_p3 }
   0xe   : > { %p84_p7 = scmp.eq.s32.totalorder %s559_s0, 1  ;;  %p90_p8 = scmp.eq.s32.totalorder %s350_s15, 1 }
   0xf   : > { %p378_p10 = scmp.lt.s32.totalorder %s512_s14, 2  ;;  %s113_s24 = sand.u32 1, %s508_s13  }
  0x10   : > { %p588_p11 = por %p84_p7, %p54_p0  ;;  %p592_p12 = por %p90_p8, %p60_p3 }
  0x11   : > { %s364_s25 = sshll.u32 %s512_s14, 12  ;;  %s353_s26 = sshll.u32 %s113_s24, 8 }
  0x12   : > { %s809_s22 = scalar_select %p588_p11, 1, 0 }
  0x13   : > { %s810_s23 = scalar_select %p592_p12, 1, 0 }
  0x14   : > { %s601_s29 = scalar_lea.hbm %s804_s1, %s364_s25  ;;  %s117_s30 = scalar_lea.vmem [#allocation3], %s353_s26 }
  0x15   : > { %s124_s3 = sshll.u32 %s117_s30, 4  ;;  %p605_p13 = pnand %p378_p10, %p577_p5  ;;  %s609_s3 = int_to_ptr.vmem [resolvable:$true] %s124_s3 }
  0x16   : > { %s611_s5 = scalar_lea.sflag [#allocation4], %s113_s24  ;;  %s416_s6 = scalar_lea.hbm %s601_s29, 4096 }
  0x17   : > { %p417_p0 = scmp.ne.s32.totalorder %s601_s29, %s416_s6  ;;  %p418_p1 = pneg %p605_p13 }
  0x18   : > { %s421_s9 = scalar_lea.hbm %s804_s1, 8192  ;;  %p422_p4 = scmp.lt.u32.totalorder %s601_s29, %s804_s1 }
  0x19   : > { %p419_p2 = pnand %p418_p1, %p417_p0  ;;  %p423_p5 = scmp.lt.u32.totalorder %s421_s9, %s416_s6 }
  0x1a   : > { %p425_p8 = scmp.lt.u32.totalorder %s416_s6, %s601_s29 }
  0x1b   : > { %p420_p3 = pneg %p419_p2  ;;  %p424_p7 = por %p423_p5, %p422_p4 }
  0x1d   : > { %p426_p10 = por %p425_p8, %p424_p7 }
  0x1f   : > { %p427_p9 = pnand %p426_p10, %p420_p3 }
  0x21   : > { %430 = shalt.err (!%p427_p9)
}
  0x22   : > { %s431_s17 = scalar_lea.vmem %s609_s3, 4096  ;;  %s514_s18 = smov [#allocation3]  }
  0x23   : > { %p432_p0 = scmp.ne.s32.totalorder %s609_s3, %s431_s17  ;;  %s436_s20 = sshll.u32 %s514_s18, 4  ;;  %s437_s20 = int_to_ptr.vmem [resolvable:$false] %s436_s20 }
  0x24   : > { %s438_s24 = scalar_lea.vmem %s437_s20, 8192  ;;  %p439_p11 = scmp.lt.s32.totalorder %s609_s3, %s437_s20 }
  0x25   : > { %p434_p2 = pnand %p432_p0, %p418_p1  ;;  %p440_p4 = scmp.lt.s32.totalorder %s438_s24, %s431_s17 }
  0x27   : > { %p435_p12 = pneg %p434_p2  ;;  %p441_p5 = por %p440_p4, %p439_p11 }
  0x29   : > { %p442_p7 = pnand %p441_p5, %p435_p12 }
  0x2b   : > { %445 = shalt.err (!%p442_p7)
}
  0x2c   : > { %s515_s25 = smov 128   ;;  %s516_s26 = smov 8  }
  0x2d   : > { %373 = dma.hbm_to_vmem [thread:$0]  (!%p605_p13), %s601_s29, 4096, %s609_s3, %s611_s5, %s515_s25, %s515_s25, %s516_s26  }
  0x2e   : > { %p356_p9 = scmp.ge.s32.totalorder %s512_s14, 1  ;;  %p132_p1 = scmp.lt.s32.totalorder %s512_s14, 3 }
  0x30   : > { %p133_p3 = pnand %p356_p9, %p132_p1 }
  0x31   : > { %s642_s27 = sand.u32 (!%p133_p3), 1, %s504_s12  }
  0x32   : > { %136 = sbr.rel (%p133_p3) target bundleno = 97 (0x61), region = 28  ;;  %s357_s28 = sshll.u32 (!%p133_p3), %s642_s27, 8 }
  0x33   : > { %s139_s30 = scalar_lea.sflag (!%p133_p3), [#allocation4], %s642_s27  ;;  %s646_s6 = scalar_lea.vmem (!%p133_p3), [#allocation3], %s357_s28 }
  0x39   : > { %491 = dma.done.wait (%p581_p6), %s139_s30, 4096  }
  0x3a   : > { %493 = vsyncadd (%p581_p6), %s139_s30, 4294963200  ;;  %s197_s29 = sld [smem:[#allocation2]]  ;;  %v165_v0 = vld [vmem:[%s646_s6] sm:$0xff]  ;;  %v166_v2 = vld [vmem:[%s646_s6 + $0x8] sm:$0xff]  ;;  %s669_s21 = scalar_lea.vmem [#allocation6], %s357_s28 }
  0x3b   : > { %v167_v3 = vld [vmem:[%s646_s6 + $0x10] sm:$0xff]  ;;  %v168_v7 = vld [vmem:[%s646_s6 + $0x18] sm:$0xff]  ;;  %v169_v8 = vld [vmem:[%s646_s6 + $0x20] sm:$0xff]  ;;  %s365_s3 = sshll.u32 %s559_s0, 12  ;;  %s277_s4 = sshll.u32 %s669_s21, 4  ;;  %s749_s4 = int_to_ptr.vmem [resolvable:$true] %s277_s4 }
  0x3c   : > { %v170_v9 = vld [vmem:[%s646_s6 + $0x28] sm:$0xff]  ;;  %v171_v13 = vld [vmem:[%s646_s6 + $0x30] sm:$0xff]  ;;  %v172_v14 = vld [vmem:[%s646_s6 + $0x38] sm:$0xff]  ;;  %s747_s7 = scalar_lea.hbm %s805_s2, %s365_s3  ;;  %s264_s8 = scalar_lea.sflag [#allocation5], %s642_s27 }
  0x3d   : > { %v173_v15 = vld [vmem:[%s646_s6 + $0x40] sm:$0xff]  ;;  %v174_v19 = vld [vmem:[%s646_s6 + $0x48] sm:$0xff]  ;;  %v175_v20 = vld [vmem:[%s646_s6 + $0x50] sm:$0xff]  ;;  %s446_s9 = scalar_lea.vmem %s749_s4, 4096  ;;  %p812_p11 = scmp.ne.s32.totalorder %s809_s22, 0 }
  0x3e   : > { %v176_v21 = vld [vmem:[%s646_s6 + $0x58] sm:$0xff]  ;;  %v177_v25 = vld [vmem:[%s646_s6 + $0x60] sm:$0xff]  ;;  %v178_v26 = vld [vmem:[%s646_s6 + $0x68] sm:$0xff]  ;;  %p447_p6 = scmp.ne.s32.totalorder %s749_s4, %s446_s9  ;;  %s517_s10 = smov [#allocation6]  }
  0x3f   : > { %v179_v27 = vld [vmem:[%s646_s6 + $0x70] sm:$0xff]  ;;  %v180_v31 = vld [vmem:[%s646_s6 + $0x78] sm:$0xff]  ;;  %v181_v32 = vld [vmem:[%s646_s6 + $0x80] sm:$0xff]  ;;  %s450_s15 = sshll.u32 %s517_s10, 4  ;;  %s451_s15 = int_to_ptr.vmem [resolvable:$false] %s450_s15 }
  0x40   : > { %v653_v1 = vstv %s197_s29  ;;  %v182_v33 = vld [vmem:[%s646_s6 + $0x88] sm:$0xff]  ;;  %v183_v37 = vld [vmem:[%s646_s6 + $0x90] sm:$0xff]  ;;  %v184_v38 = vld [vmem:[%s646_s6 + $0x98] sm:$0xff]  ;;  %p448_p12 = pnand %p447_p6, %p812_p11  ;;  %s452_s17 = scalar_lea.vmem %s451_s15, 8192 }
  0x41   : > { %v199_v4 = vmul.f32 %v653_v1, %v165_v0  ;;  %v200_v5 = vmul.f32 %v653_v1, %v166_v2  ;;  %v201_v6 = vmul.f32 %v653_v1, %v167_v3  ;;  %v202_v10 = vmul.f32 %v653_v1, %v168_v7  ;;  %v185_v39 = vld [vmem:[%s646_s6 + $0xa0] sm:$0xff]  ;;  %v186_v43 = vld [vmem:[%s646_s6 + $0xa8] sm:$0xff]  ;;  %v187_v44 = vld [vmem:[%s646_s6 + $0xb0] sm:$0xff]  ;;  %p453_p8 = scmp.lt.s32.totalorder %s749_s4, %s451_s15  ;;  %p454_p10 = scmp.lt.s32.totalorder %s452_s17, %s446_s9 }
  0x42   : > { %v203_v11 = vmul.f32 %v653_v1, %v169_v8  ;;  %v204_v12 = vmul.f32 %v653_v1, %v170_v9  ;;  %v205_v16 = vmul.f32 %v653_v1, %v171_v13  ;;  %v206_v17 = vmul.f32 %v653_v1, %v172_v14  ;;  %v188_v45 = vld [vmem:[%s646_s6 + $0xb8] sm:$0xff]  ;;  %v189_v49 = vld [vmem:[%s646_s6 + $0xc0] sm:$0xff]  ;;  %v190_v50 = vld [vmem:[%s646_s6 + $0xc8] sm:$0xff]  ;;  %p449_p13 = pneg %p448_p12 }
  0x43   : > { %231 = vst [vmem:[%s669_s21] sm:$0xff] %v199_v4  ;;  %232 = vst [vmem:[%s669_s21 + $0x8] sm:$0xff] %v200_v5  ;;  %v207_v18 = vmul.f32 %v653_v1, %v173_v15  ;;  %v208_v22 = vmul.f32 %v653_v1, %v174_v19  ;;  %v209_v23 = vmul.f32 %v653_v1, %v175_v20  ;;  %v191_v51 = vld [vmem:[%s646_s6 + $0xd0] sm:$0xff]  ;;  %v192_v55 = vld [vmem:[%s646_s6 + $0xd8] sm:$0xff]  ;;  %p455_p0 = por %p454_p10, %p453_p8 }
  0x44   : > { %233 = vst [vmem:[%s669_s21 + $0x10] sm:$0xff] %v201_v6  ;;  %234 = vst [vmem:[%s669_s21 + $0x18] sm:$0xff] %v202_v10  ;;  %v210_v24 = vmul.f32 %v653_v1, %v176_v21  ;;  %v211_v28 = vmul.f32 %v653_v1, %v177_v25  ;;  %v212_v29 = vmul.f32 %v653_v1, %v178_v26  ;;  %v193_v56 = vld [vmem:[%s646_s6 + $0xe0] sm:$0xff]  ;;  %v194_v57 = vld [vmem:[%s646_s6 + $0xe8] sm:$0xff] }
  0x45   : > { %235 = vst [vmem:[%s669_s21 + $0x20] sm:$0xff] %v203_v11  ;;  %236 = vst [vmem:[%s669_s21 + $0x28] sm:$0xff] %v204_v12  ;;  %v213_v30 = vmul.f32 %v653_v1, %v179_v27  ;;  %v214_v34 = vmul.f32 %v653_v1, %v180_v31  ;;  %v215_v35 = vmul.f32 %v653_v1, %v181_v32  ;;  %v195_v61 = vld [vmem:[%s646_s6 + $0xf0] sm:$0xff]  ;;  %v196_v62 = vld [vmem:[%s646_s6 + $0xf8] sm:$0xff]  ;;  %p456_p2 = pnand %p455_p0, %p449_p13 }
  0x46   : > { %237 = vst [vmem:[%s669_s21 + $0x30] sm:$0xff] %v205_v16  ;;  %238 = vst [vmem:[%s669_s21 + $0x38] sm:$0xff] %v206_v17  ;;  %v216_v36 = vmul.f32 %v653_v1, %v182_v33  ;;  %v217_v40 = vmul.f32 %v653_v1, %v183_v37  ;;  %v218_v41 = vmul.f32 %v653_v1, %v184_v38 }
  0x47   : > { %239 = vst [vmem:[%s669_s21 + $0x40] sm:$0xff] %v207_v18  ;;  %240 = vst [vmem:[%s669_s21 + $0x48] sm:$0xff] %v208_v22  ;;  %v219_v42 = vmul.f32 %v653_v1, %v185_v39  ;;  %v220_v46 = vmul.f32 %v653_v1, %v186_v43  ;;  %v221_v47 = vmul.f32 %v653_v1, %v187_v44 }
  0x48   : > { %241 = vst [vmem:[%s669_s21 + $0x50] sm:$0xff] %v209_v23  ;;  %242 = vst [vmem:[%s669_s21 + $0x58] sm:$0xff] %v210_v24  ;;  %v222_v48 = vmul.f32 %v653_v1, %v188_v45  ;;  %v223_v52 = vmul.f32 %v653_v1, %v189_v49  ;;  %v224_v53 = vmul.f32 %v653_v1, %v190_v50 }
  0x49   : > { %243 = vst [vmem:[%s669_s21 + $0x60] sm:$0xff] %v211_v28  ;;  %244 = vst [vmem:[%s669_s21 + $0x68] sm:$0xff] %v212_v29  ;;  %v225_v54 = vmul.f32 %v653_v1, %v191_v51  ;;  %v226_v58 = vmul.f32 %v653_v1, %v192_v55  ;;  %v227_v59 = vmul.f32 %v653_v1, %v193_v56 }
  0x4a   : > { %245 = vst [vmem:[%s669_s21 + $0x70] sm:$0xff] %v213_v30  ;;  %246 = vst [vmem:[%s669_s21 + $0x78] sm:$0xff] %v214_v34  ;;  %v228_v60 = vmul.f32 %v653_v1, %v194_v57  ;;  %v229_v63 = vmul.f32 %v653_v1, %v195_v61  ;;  %v230_v0 = vmul.f32 %v653_v1, %v196_v62 }
  0x4b   : > { %247 = vst [vmem:[%s669_s21 + $0x80] sm:$0xff] %v215_v35  ;;  %248 = vst [vmem:[%s669_s21 + $0x88] sm:$0xff] %v216_v36 }
  0x4c   : > { %249 = vst [vmem:[%s669_s21 + $0x90] sm:$0xff] %v217_v40  ;;  %250 = vst [vmem:[%s669_s21 + $0x98] sm:$0xff] %v218_v41 }
  0x4d   : > { %251 = vst [vmem:[%s669_s21 + $0xa0] sm:$0xff] %v219_v42  ;;  %252 = vst [vmem:[%s669_s21 + $0xa8] sm:$0xff] %v220_v46 }
  0x4e   : > { %253 = vst [vmem:[%s669_s21 + $0xb0] sm:$0xff] %v221_v47  ;;  %254 = vst [vmem:[%s669_s21 + $0xb8] sm:$0xff] %v222_v48 }
  0x4f   : > { %255 = vst [vmem:[%s669_s21 + $0xc0] sm:$0xff] %v223_v52  ;;  %256 = vst [vmem:[%s669_s21 + $0xc8] sm:$0xff] %v224_v53 }
  0x50   : > { %257 = vst [vmem:[%s669_s21 + $0xd0] sm:$0xff] %v225_v54  ;;  %258 = vst [vmem:[%s669_s21 + $0xd8] sm:$0xff] %v226_v58 }
  0x51   : > { %259 = vst [vmem:[%s669_s21 + $0xe0] sm:$0xff] %v227_v59  ;;  %260 = vst [vmem:[%s669_s21 + $0xe8] sm:$0xff] %v228_v60 }
  0x52   : > { %261 = vst [vmem:[%s669_s21 + $0xf0] sm:$0xff] %v229_v63  ;;  %262 = vst [vmem:[%s669_s21 + $0xf8] sm:$0xff] %v230_v0 }
  0x53   : > { %459 = shalt.err (!%p456_p2)
}
  0x54   : > { %s460_s18 = scalar_lea.hbm %s747_s7, 4096  ;;  %s464_s25 = scalar_lea.hbm %s805_s2, 8192 }
  0x55   : > { %p461_p4 = scmp.ne.s32.totalorder %s747_s7, %s460_s18  ;;  %p465_p9 = scmp.lt.u32.totalorder %s747_s7, %s805_s2 }
  0x56   : > { %p466_p1 = scmp.lt.u32.totalorder %s464_s25, %s460_s18  ;;  %p468_p6 = scmp.lt.u32.totalorder %s460_s18, %s747_s7 }
  0x57   : > { %p462_p5 = pnand %p461_p4, %p812_p11 }
  0x58   : > { %p467_p3 = por %p466_p1, %p465_p9 }
  0x59   : > { %p463_p7 = pneg %p462_p5 }
  0x5a   : > { %p469_p12 = por %p468_p6, %p467_p3 }
  0x5c   : > { %p470_p13 = pnand %p469_p12, %p463_p7 }
  0x5e   : > { %473 = shalt.err (!%p470_p13)
}
  0x5f   : > { %s518_s30 = smov 128   ;;  %s519_s6 = smov 8  }
  0x60   : > { %368 = dma.vmem_to_hbm [thread:$0]  (%p812_p11), %s749_s4, 4096, %s747_s7, %s264_s8, %s518_s30, %s518_s30, %s519_s6  }
  0x61 PF: > { %s292_s29 = sand.u32 1, %s500_s11   ;;  %p813_p8 = scmp.ne.s32.totalorder %s810_s23, 0 }
  0x62   : > { %p814_p10 = scmp.ge.s32.totalorder %s512_s14, 2  ;;  %s293_s21 = scalar_lea.sflag [#allocation5], %s292_s29 }
  0x64   : > { %p375_p0 = pnand %p814_p10, %p813_p8 }
  0x66   : > { %495 = dma.done.wait (!%p375_p0), %s293_s21, 4096  }
  0x67   : > { %497 = vsyncadd (!%p375_p0), %s293_s21, 4294963200  ;;  %p16_p2 = scmp.ge.s32.totalorder %s563_s16, 4   ;;  %s815_s11 = smov %s504_s12 }
  0x68   : > { %s816_s12 = smov %s508_s13  ;;  %s817_s13 = smov %s575_s19 }
  0x69   : > { %s818_s14 = smov %s563_s16  ;;  %18 = sbr.rel (!%p16_p2) target bundleno = 7 (0x7), region = 73 }
  0x70   :  { %298 = vsyncpa [#allocation4], 1 }
  0x71   :  { %300 = vsyncpa [#allocation4 + $0x1], 1 }
  0x72   :  { %301 = vsyncpa [#allocation5], 1 }
  0x73   :  { %303 = vsyncpa [#allocation5 + $0x1], 1 }

</bundles_post_ra>
